<compile_context>
chip_gen: v5e
topology: v5e:2x2
jax: 0.10.0
libtpu: 0.0.40
codegen_flags: <defaults>
</compile_context>

<pallas_src>
import functools

import jax
import jax.numpy as jnp
from jax.experimental import pallas as pl
from jax.experimental.pallas import tpu as pltpu

LANE = 128
_MIB = 1024 * 1024


def _round_up(n: int, m: int) -> int:
    return (n + m - 1) // m * m


def _pad_to(a, target_shape):
    pads = [(0, t - s) for s, t in zip(a.shape, target_shape)]
    if all(p == (0, 0) for p in pads):
        return a
    return jnp.pad(a, pads)


def _device_vmem_cap() -> int:
    """Physical VMEM per TensorCore minus headroom (portable to v7x's 64 MiB)."""
    try:
        cap = pltpu.get_tpu_info().vmem_capacity_bytes
        return max(16 * _MIB, int(cap) - 8 * _MIB)
    except Exception:  # interpret mode / no TPU info available
        return 56 * _MIB  # conservative: fits every generation (v7x has 64 MiB)


def _mlp_kernel(x_ref, w1_ref, b1_ref, w2_ref, b2_ref, w3_ref, b3_ref, out_ref,
                *, apply_softmax: bool, num_classes: int, padded_classes: int):
    # layer 1: bf16 MXU operands (cast on the VPU, hidden under the matmul),
    # f32 accumulation, f32 bias + ReLU (safe on v5e's f32-only VPU).
    x = x_ref[...].astype(jnp.bfloat16)
    h1 = jnp.dot(x, w1_ref[...], preferred_element_type=jnp.float32)
    h1 = jnp.maximum(h1 + b1_ref[...], 0.0)
    # layer 2
    h2 = jnp.dot(h1.astype(jnp.bfloat16), w2_ref[...],
                 preferred_element_type=jnp.float32)
    h2 = jnp.maximum(h2 + b2_ref[...], 0.0)
    # layer 3: logits
    logits = jnp.dot(h2.astype(jnp.bfloat16), w3_ref[...],
                     preferred_element_type=jnp.float32)
    logits = logits + b3_ref[...]

    if apply_softmax:
        if num_classes != padded_classes:
            # class dim is zero-padded: push padded lanes to -inf so they do
            # not pollute the max; exp(-inf) == 0 keeps the sum clean too.
            col = jax.lax.broadcasted_iota(jnp.int32, logits.shape, 1)
            logits = jnp.where(col < num_classes, logits, -jnp.inf)
        m = jnp.max(logits, axis=-1, keepdims=True)
        e = jnp.exp(logits - m)
        denom = jnp.sum(e, axis=-1, keepdims=True)
        # exact divide (NOT approx reciprocal): rows sum to 1 within f32 rounding.
        logits = e / denom

    out_ref[...] = logits.astype(out_ref.dtype)


def prepare_params(params, feature_align: int = LANE):
    """One-time padding + bf16 cast of the weights (hoisted out of the forward).

    Weights stored (in, out), biases (1, out).  Feature dims are zero-padded to
    a multiple of `feature_align` (128 keeps every tile lane-dense; pass 256 on
    v6e/v7x to fill the 256x256 MXU when the real dims are >= 128).
    """
    w1, b1, w2, b2, w3, b3 = (params["w1"], params["b1"], params["w2"],
                              params["b2"], params["w3"], params["b3"])
    D_in, H = w1.shape
    C = w3.shape[1]
    d_in_p = _round_up(D_in, feature_align)
    h_p = _round_up(H, feature_align)
    c_p = _round_up(C, feature_align)
    return {
        "w1": _pad_to(w1, (d_in_p, h_p)).astype(jnp.bfloat16),
        "b1": _pad_to(b1, (1, h_p)).astype(jnp.float32),
        "w2": _pad_to(w2, (h_p, h_p)).astype(jnp.bfloat16),
        "b2": _pad_to(b2, (1, h_p)).astype(jnp.float32),
        "w3": _pad_to(w3, (h_p, c_p)).astype(jnp.bfloat16),
        "b3": _pad_to(b3, (1, c_p)).astype(jnp.float32),
        "dims": (int(D_in), int(H), int(C)),
    }


def mlp_classifier_forward(x, params, apply_softmax: bool = False,
                           tile_b: int | None = None):
    """Fused MLP forward. x: [B, D_in] float32.

    `params` is either the raw param dict or the output of prepare_params()
    (prepare once and reuse to avoid re-padding/casting weights every call).
    Returns [B, C] float32 logits (or softmax probabilities).
    """
    if "dims" not in params:
        params = prepare_params(params)
    w1p, b1p = params["w1"], params["b1"]
    w2p, b2p = params["w2"], params["b2"]
    w3p, b3p = params["w3"], params["b3"]
    D_in, H, C = params["dims"]

    B = x.shape[0]
    d_in_p, h_p = w1p.shape
    c_p = w3p.shape[1]

    # --- batch tiling --------------------------------------------------------
    if tile_b is None:
        b_aligned = _round_up(max(B, 1), LANE)
        if b_aligned >= 2 * LANE:
            # at least 2 grid steps so the "parallel" batch axis can shard
            # across v7x's two TensorCores (no-op on v5e/v6e).
            tile_b = min(512, max(LANE, (b_aligned // 2) // LANE * LANE))
        else:
            tile_b = LANE
    else:
        tile_b = max(8, _round_up(int(tile_b), 8))  # keep sublane tiling legal

    # --- VMEM budget (single-buffered resident weights + streamed x/out) -----
    weight_bytes = ((w1p.size + w2p.size + w3p.size) * 2
                    + (b1p.size + b2p.size + b3p.size) * 4)

    def footprint(tb):
        streamed = 2 * tb * (d_in_p + c_p) * 4       # double-buffered x / out tiles (f32)
        live = tb * (d_in_p * 2                      # in-kernel bf16 cast of x
                     + h_p * (4 + 2) * 2             # h1/h2 in f32 + their bf16 casts
                     + c_p * 4)                      # f32 logits
        return weight_bytes + streamed + live + 4 * _MIB

    vmem_cap = _device_vmem_cap()
    while footprint(tile_b) > vmem_cap and tile_b > LANE:
        tile_b = max(LANE, _round_up(tile_b // 2, 8))
    # TODO(synk): if the resident bf16 weights alone exceed vmem_cap (very large
    # H on v7x), fall back to K-tiling w2 with an accumulator instead of residency.
    vmem_limit = int(min(vmem_cap, max(footprint(tile_b), 8 * _MIB)))

    b_p = _round_up(max(B, tile_b), tile_b)
    grid = (b_p // tile_b,)

    # x stays f32: no wrapper-side bf16 rewrite pass over the activations; the
    # kernel casts right before the first matmul.
    if x.dtype != jnp.float32:
        x = x.astype(jnp.float32)
    x_p = _pad_to(x, (b_p, d_in_p))

    kernel = functools.partial(_mlp_kernel, apply_softmax=apply_softmax,
                               num_classes=C, padded_classes=c_p)

    flops = 2 * b_p * (d_in_p * h_p + h_p * h_p + h_p * c_p)
    transcendentals = b_p * c_p if apply_softmax else 0
    bytes_accessed = (x_p.size * 4
                      + (w1p.size + w2p.size + w3p.size) * 2
                      + (b1p.size + b2p.size + b3p.size) * 4
                      + b_p * c_p * 4)

    def _build(buffered_residents: bool):
        def resident(shape):
            kwargs = {}
            if buffered_residents:
                # constant index_map -> never re-fetched: one buffer suffices,
                # halving the resident weights' VMEM footprint.
                kwargs = dict(pipeline_mode=pl.Buffered(1))
            return pl.BlockSpec(shape, lambda i: (0,) * len(shape), **kwargs)

        return pl.pallas_call(
            kernel,
            out_shape=jax.ShapeDtypeStruct((b_p, c_p), jnp.float32),
            grid=grid,
            in_specs=[
                pl.BlockSpec((tile_b, d_in_p), lambda i: (i, 0)),  # x: batch-tiled
                resident((d_in_p, h_p)),                           # w1
                resident((1, h_p)),                                # b1
                resident((h_p, h_p)),                              # w2
                resident((1, h_p)),                                # b2
                resident((h_p, c_p)),                              # w3
                resident((1, c_p)),                                # b3
            ],
            out_specs=pl.BlockSpec((tile_b, c_p), lambda i: (i, 0)),
            compiler_params=pltpu.CompilerParams(
                dimension_semantics=("parallel",),   # v7x: shard batch over 2 TCs
                vmem_limit_bytes=vmem_limit),
            cost_estimate=pl.CostEstimate(flops=flops,
                                          transcendentals=transcendentals,
                                          bytes_accessed=bytes_accessed),
        )

    try:
        out_p = _build(True)(x_p, w1p, b1p, w2p, b2p, w3p, b3p)
    except Exception:
        # graceful fallback if this jax build rejects pipeline_mode=pl.Buffered(1)
        out_p = _build(False)(x_p, w1p, b1p, w2p, b2p, w3p, b3p)

    # slice back to the logical (un-padded) batch / class extents
    return out_p[:B, :C]


def init_params(key, input_dim, hidden_dim, output_dim):
    """PyTorch-Linear-style init; weights stored transposed to (in, out),
    biases as (1, out)."""
    ks = jax.random.split(key, 6)

    def lin(kw, kb, fan_in, fan_out):
        bound = 1.0 / jnp.sqrt(fan_in)
        w = jax.random.uniform(kw, (fan_in, fan_out), jnp.float32, -bound, bound)
        b = jax.random.uniform(kb, (1, fan_out), jnp.float32, -bound, bound)
        return w, b

    w1, b1 = lin(ks[0], ks[1], input_dim, hidden_dim)
    w2, b2 = lin(ks[2], ks[3], hidden_dim, hidden_dim)
    w3, b3 = lin(ks[4], ks[5], hidden_dim, output_dim)
    return {"w1": w1, "b1": b1, "w2": w2, "b2": b2, "w3": w3, "b3": b3}


def _reference_forward(x, params, apply_softmax=False):
    """Pure-JAX reference matching the kernel's precision policy (bf16 matmul
    operands, f32 accumulation / elementwise)."""
    bf = jnp.bfloat16

    def dot(a, w):
        return jnp.dot(a.astype(bf), w.astype(bf),
                       preferred_element_type=jnp.float32)

    h = jnp.maximum(dot(x, params["w1"]) + params["b1"], 0.0)
    h = jnp.maximum(dot(h, params["w2"]) + params["b2"], 0.0)
    logits = dot(h, params["w3"]) + params["b3"]
    if apply_softmax:
        logits = jax.nn.softmax(logits, axis=1)
    return logits


if __name__ == "__main__":
    key = jax.random.PRNGKey(0)
    k_x, k_p = jax.random.split(key)

    batch, input_dim, hidden_dim, output_dim = 8, 16, 32, 10

    x = jax.random.normal(k_x, (batch, input_dim), dtype=jnp.float32)
    params = init_params(k_p, input_dim, hidden_dim, output_dim)
    prepared = prepare_params(params)   # pad + bf16-cast the weights ONCE

    # plain forward (logits)
    out = mlp_classifier_forward(x, prepared, apply_softmax=False)
    out = jax.block_until_ready(out)

    # forward with softmax over dim=1
    out_sm = mlp_classifier_forward(x, prepared, apply_softmax=True)
    out_sm = jax.block_until_ready(out_sm)

    # correctness vs precision-matched reference
    ref = _reference_forward(x, params, apply_softmax=False)
    ref_sm = _reference_forward(x, params, apply_softmax=True)
    assert out.shape == (batch, output_dim)
    assert out_sm.shape == (batch, output_dim)
    assert jnp.allclose(out, ref, atol=1e-2, rtol=1e-2)
    assert jnp.allclose(out_sm, ref_sm, atol=1e-2, rtol=1e-2)
    # softmax rows sum to 1 over the real (un-padded) classes (exact divide)
    assert jnp.allclose(jnp.sum(out_sm, axis=1), 1.0, atol=1e-3)

    print("KERNEL_OK")
</pallas_src>

<mosaic_0001>
module attributes {stable_mosaic.version = 11 : i64} {
  func.func @_mlp_kernel(%arg0: i32, %arg1: memref<128x128xf32, #tpu.memory_space<vmem>>, %arg2: memref<128x128xbf16, #tpu.memory_space<vmem>>, %arg3: memref<1x128xf32, #tpu.memory_space<vmem>>, %arg4: memref<128x128xbf16, #tpu.memory_space<vmem>>, %arg5: memref<1x128xf32, #tpu.memory_space<vmem>>, %arg6: memref<128x128xbf16, #tpu.memory_space<vmem>>, %arg7: memref<1x128xf32, #tpu.memory_space<vmem>>, %arg8: memref<128x128xf32, #tpu.memory_space<vmem>>) attributes {dimension_semantics = [#tpu.dimension_semantics<parallel>], iteration_bounds = array<i64: 1>, scalar_prefetch = 0 : i64, scratch_operands = 0 : i64, tpu.core_type = #tpu.core_type<tc>, window_params = [{transform_indices = @transform_0, window_bounds = array<i64: 128, 128>}, {pipeline_mode = #tpu.pipeline_mode<synchronous>, transform_indices = @transform_1, window_bounds = array<i64: 128, 128>}, {pipeline_mode = #tpu.pipeline_mode<synchronous>, transform_indices = @transform_2, window_bounds = array<i64: 1, 128>}, {pipeline_mode = #tpu.pipeline_mode<synchronous>, transform_indices = @transform_3, window_bounds = array<i64: 128, 128>}, {pipeline_mode = #tpu.pipeline_mode<synchronous>, transform_indices = @transform_4, window_bounds = array<i64: 1, 128>}, {pipeline_mode = #tpu.pipeline_mode<synchronous>, transform_indices = @transform_5, window_bounds = array<i64: 128, 128>}, {pipeline_mode = #tpu.pipeline_mode<synchronous>, transform_indices = @transform_6, window_bounds = array<i64: 1, 128>}, {transform_indices = @transform_7, window_bounds = array<i64: 128, 128>}]} {
    %c0 = arith.constant 0 : index
    %c0_0 = arith.constant 0 : index
    %0 = vector.load %arg1[%c0, %c0_0] : memref<128x128xf32, #tpu.memory_space<vmem>>, vector<128x128xf32>
    %1 = arith.truncf %0 : vector<128x128xf32> to vector<128x128xbf16>
    %c0_1 = arith.constant 0 : index
    %c0_2 = arith.constant 0 : index
    %2 = vector.load %arg2[%c0_1, %c0_2] : memref<128x128xbf16, #tpu.memory_space<vmem>>, vector<128x128xbf16>
    %cst = arith.constant dense<0.000000e+00> : vector<128x128xf32>
    %3 = tpu.matmul %1, %2, %cst {dimension_numbers = #tpu.dot_dimension_numbers<[1], [0], [0], [1], [0, 0, 1, 1], [], []>} : vector<128x128xbf16>, vector<128x128xbf16>, vector<128x128xf32> -> vector<128x128xf32>
    %c0_3 = arith.constant 0 : index
    %c0_4 = arith.constant 0 : index
    %4 = vector.load %arg3[%c0_3, %c0_4] : memref<1x128xf32, #tpu.memory_space<vmem>>, vector<1x128xf32>
    %5 = vector.broadcast %4 : vector<1x128xf32> to vector<128x128xf32>
    %6 = arith.addf %3, %5 : vector<128x128xf32>
    %cst_5 = arith.constant 0.000000e+00 : f32
    %7 = vector.broadcast %cst_5 : f32 to vector<128x128xf32>
    %8 = arith.maximumf %6, %7 : vector<128x128xf32>
    %9 = arith.truncf %8 : vector<128x128xf32> to vector<128x128xbf16>
    %c0_6 = arith.constant 0 : index
    %c0_7 = arith.constant 0 : index
    %10 = vector.load %arg4[%c0_6, %c0_7] : memref<128x128xbf16, #tpu.memory_space<vmem>>, vector<128x128xbf16>
    %cst_8 = arith.constant dense<0.000000e+00> : vector<128x128xf32>
    %11 = tpu.matmul %9, %10, %cst_8 {dimension_numbers = #tpu.dot_dimension_numbers<[1], [0], [0], [1], [0, 0, 1, 1], [], []>} : vector<128x128xbf16>, vector<128x128xbf16>, vector<128x128xf32> -> vector<128x128xf32>
    %c0_9 = arith.constant 0 : index
    %c0_10 = arith.constant 0 : index
    %12 = vector.load %arg5[%c0_9, %c0_10] : memref<1x128xf32, #tpu.memory_space<vmem>>, vector<1x128xf32>
    %13 = vector.broadcast %12 : vector<1x128xf32> to vector<128x128xf32>
    %14 = arith.addf %11, %13 : vector<128x128xf32>
    %cst_11 = arith.constant 0.000000e+00 : f32
    %15 = vector.broadcast %cst_11 : f32 to vector<128x128xf32>
    %16 = arith.maximumf %14, %15 : vector<128x128xf32>
    %17 = arith.truncf %16 : vector<128x128xf32> to vector<128x128xbf16>
    %c0_12 = arith.constant 0 : index
    %c0_13 = arith.constant 0 : index
    %18 = vector.load %arg6[%c0_12, %c0_13] : memref<128x128xbf16, #tpu.memory_space<vmem>>, vector<128x128xbf16>
    %cst_14 = arith.constant dense<0.000000e+00> : vector<128x128xf32>
    %19 = tpu.matmul %17, %18, %cst_14 {dimension_numbers = #tpu.dot_dimension_numbers<[1], [0], [0], [1], [0, 0, 1, 1], [], []>} : vector<128x128xbf16>, vector<128x128xbf16>, vector<128x128xf32> -> vector<128x128xf32>
    %c0_15 = arith.constant 0 : index
    %c0_16 = arith.constant 0 : index
    %20 = vector.load %arg7[%c0_15, %c0_16] : memref<1x128xf32, #tpu.memory_space<vmem>>, vector<1x128xf32>
    %21 = vector.broadcast %20 : vector<1x128xf32> to vector<128x128xf32>
    %22 = arith.addf %19, %21 : vector<128x128xf32>
    %c0_17 = arith.constant 0 : index
    %c0_18 = arith.constant 0 : index
    %23 = vector.load %arg8[%c0_17, %c0_18] : memref<128x128xf32, #tpu.memory_space<vmem>>, vector<128x128xf32>
    tpu.vector_store %arg8[%c0_17, %c0_18], %22 {strides = array<i32>} : memref<128x128xf32, #tpu.memory_space<vmem>>, vector<128x128xf32>,
    return
  }
  func.func @transform_0(%arg0: i32) -> (i32, i32) {
    %c0_i32 = arith.constant 0 : i32
    %c0_i32_0 = arith.constant 0 : i32
    return %arg0, %c0_i32 : i32, i32
  }
  func.func @transform_1(%arg0: i32) -> (i32, i32) {
    %c0_i32 = arith.constant 0 : i32
    %c0_i32_0 = arith.constant 0 : i32
    %c0_i32_1 = arith.constant 0 : i32
    return %c0_i32, %c0_i32_0 : i32, i32
  }
  func.func @transform_2(%arg0: i32) -> (i32, i32) {
    %c0_i32 = arith.constant 0 : i32
    %c0_i32_0 = arith.constant 0 : i32
    %c0_i32_1 = arith.constant 0 : i32
    return %c0_i32, %c0_i32_0 : i32, i32
  }
  func.func @transform_3(%arg0: i32) -> (i32, i32) {
    %c0_i32 = arith.constant 0 : i32
    %c0_i32_0 = arith.constant 0 : i32
    %c0_i32_1 = arith.constant 0 : i32
    return %c0_i32, %c0_i32_0 : i32, i32
  }
  func.func @transform_4(%arg0: i32) -> (i32, i32) {
    %c0_i32 = arith.constant 0 : i32
    %c0_i32_0 = arith.constant 0 : i32
    %c0_i32_1 = arith.constant 0 : i32
    return %c0_i32, %c0_i32_0 : i32, i32
  }
  func.func @transform_5(%arg0: i32) -> (i32, i32) {
    %c0_i32 = arith.constant 0 : i32
    %c0_i32_0 = arith.constant 0 : i32
    %c0_i32_1 = arith.constant 0 : i32
    return %c0_i32, %c0_i32_0 : i32, i32
  }
  func.func @transform_6(%arg0: i32) -> (i32, i32) {
    %c0_i32 = arith.constant 0 : i32
    %c0_i32_0 = arith.constant 0 : i32
    %c0_i32_1 = arith.constant 0 : i32
    return %c0_i32, %c0_i32_0 : i32, i32
  }
  func.func @transform_7(%arg0: i32) -> (i32, i32) {
    %c0_i32 = arith.constant 0 : i32
    %c0_i32_0 = arith.constant 0 : i32
    return %arg0, %c0_i32 : i32, i32
  }
}

module attributes {stable_mosaic.version = 11 : i64} {
  func.func @_mlp_kernel(%arg0: i32, %arg1: memref<128x128xf32, #tpu.memory_space<vmem>>, %arg2: memref<128x128xbf16, #tpu.memory_space<vmem>>, %arg3: memref<1x128xf32, #tpu.memory_space<vmem>>, %arg4: memref<128x128xbf16, #tpu.memory_space<vmem>>, %arg5: memref<1x128xf32, #tpu.memory_space<vmem>>, %arg6: memref<128x128xbf16, #tpu.memory_space<vmem>>, %arg7: memref<1x128xf32, #tpu.memory_space<vmem>>, %arg8: memref<128x128xf32, #tpu.memory_space<vmem>>) attributes {dimension_semantics = [#tpu.dimension_semantics<parallel>], iteration_bounds = array<i64: 1>, scalar_prefetch = 0 : i64, scratch_operands = 0 : i64, tpu.core_type = #tpu.core_type<tc>, window_params = [{transform_indices = @transform_0, window_bounds = array<i64: 128, 128>}, {pipeline_mode = #tpu.pipeline_mode<synchronous>, transform_indices = @transform_1, window_bounds = array<i64: 128, 128>}, {pipeline_mode = #tpu.pipeline_mode<synchronous>, transform_indices = @transform_2, window_bounds = array<i64: 1, 128>}, {pipeline_mode = #tpu.pipeline_mode<synchronous>, transform_indices = @transform_3, window_bounds = array<i64: 128, 128>}, {pipeline_mode = #tpu.pipeline_mode<synchronous>, transform_indices = @transform_4, window_bounds = array<i64: 1, 128>}, {pipeline_mode = #tpu.pipeline_mode<synchronous>, transform_indices = @transform_5, window_bounds = array<i64: 128, 128>}, {pipeline_mode = #tpu.pipeline_mode<synchronous>, transform_indices = @transform_6, window_bounds = array<i64: 1, 128>}, {transform_indices = @transform_7, window_bounds = array<i64: 128, 128>}]} {
    %c0 = arith.constant 0 : index
    %c0_0 = arith.constant 0 : index
    %0 = vector.load %arg1[%c0, %c0_0] : memref<128x128xf32, #tpu.memory_space<vmem>>, vector<128x128xf32>
    %1 = arith.truncf %0 : vector<128x128xf32> to vector<128x128xbf16>
    %c0_1 = arith.constant 0 : index
    %c0_2 = arith.constant 0 : index
    %2 = vector.load %arg2[%c0_1, %c0_2] : memref<128x128xbf16, #tpu.memory_space<vmem>>, vector<128x128xbf16>
    %cst = arith.constant dense<0.000000e+00> : vector<128x128xf32>
    %3 = tpu.matmul %1, %2, %cst {dimension_numbers = #tpu.dot_dimension_numbers<[1], [0], [0], [1], [0, 0, 1, 1], [], []>} : vector<128x128xbf16>, vector<128x128xbf16>, vector<128x128xf32> -> vector<128x128xf32>
    %c0_3 = arith.constant 0 : index
    %c0_4 = arith.constant 0 : index
    %4 = vector.load %arg3[%c0_3, %c0_4] : memref<1x128xf32, #tpu.memory_space<vmem>>, vector<1x128xf32>
    %5 = vector.broadcast %4 : vector<1x128xf32> to vector<128x128xf32>
    %6 = arith.addf %3, %5 : vector<128x128xf32>
    %cst_5 = arith.constant 0.000000e+00 : f32
    %7 = vector.broadcast %cst_5 : f32 to vector<128x128xf32>
    %8 = arith.maximumf %6, %7 : vector<128x128xf32>
    %9 = arith.truncf %8 : vector<128x128xf32> to vector<128x128xbf16>
    %c0_6 = arith.constant 0 : index
    %c0_7 = arith.constant 0 : index
    %10 = vector.load %arg4[%c0_6, %c0_7] : memref<128x128xbf16, #tpu.memory_space<vmem>>, vector<128x128xbf16>
    %cst_8 = arith.constant dense<0.000000e+00> : vector<128x128xf32>
    %11 = tpu.matmul %9, %10, %cst_8 {dimension_numbers = #tpu.dot_dimension_numbers<[1], [0], [0], [1], [0, 0, 1, 1], [], []>} : vector<128x128xbf16>, vector<128x128xbf16>, vector<128x128xf32> -> vector<128x128xf32>
    %c0_9 = arith.constant 0 : index
    %c0_10 = arith.constant 0 : index
    %12 = vector.load %arg5[%c0_9, %c0_10] : memref<1x128xf32, #tpu.memory_space<vmem>>, vector<1x128xf32>
    %13 = vector.broadcast %12 : vector<1x128xf32> to vector<128x128xf32>
    %14 = arith.addf %11, %13 : vector<128x128xf32>
    %cst_11 = arith.constant 0.000000e+00 : f32
    %15 = vector.broadcast %cst_11 : f32 to vector<128x128xf32>
    %16 = arith.maximumf %14, %15 : vector<128x128xf32>
    %17 = arith.truncf %16 : vector<128x128xf32> to vector<128x128xbf16>
    %c0_12 = arith.constant 0 : index
    %c0_13 = arith.constant 0 : index
    %18 = vector.load %arg6[%c0_12, %c0_13] : memref<128x128xbf16, #tpu.memory_space<vmem>>, vector<128x128xbf16>
    %cst_14 = arith.constant dense<0.000000e+00> : vector<128x128xf32>
    %19 = tpu.matmul %17, %18, %cst_14 {dimension_numbers = #tpu.dot_dimension_numbers<[1], [0], [0], [1], [0, 0, 1, 1], [], []>} : vector<128x128xbf16>, vector<128x128xbf16>, vector<128x128xf32> -> vector<128x128xf32>
    %c0_15 = arith.constant 0 : index
    %c0_16 = arith.constant 0 : index
    %20 = vector.load %arg7[%c0_15, %c0_16] : memref<1x128xf32, #tpu.memory_space<vmem>>, vector<1x128xf32>
    %21 = vector.broadcast %20 : vector<1x128xf32> to vector<128x128xf32>
    %22 = arith.addf %19, %21 : vector<128x128xf32>
    %c0_17 = arith.constant 0 : index
    %c0_18 = arith.constant 0 : index
    %23 = vector.load %arg8[%c0_17, %c0_18] : memref<128x128xf32, #tpu.memory_space<vmem>>, vector<128x128xf32>
    tpu.vector_store %arg8[%c0_17, %c0_18], %22 {strides = array<i32>} : memref<128x128xf32, #tpu.memory_space<vmem>>, vector<128x128xf32>,
    return
  }
  func.func @transform_0(%arg0: i32) -> (i32, i32) {
    %c0_i32 = arith.constant 0 : i32
    %c0_i32_0 = arith.constant 0 : i32
    return %arg0, %c0_i32 : i32, i32
  }
  func.func @transform_1(%arg0: i32) -> (i32, i32) {
    %c0_i32 = arith.constant 0 : i32
    %c0_i32_0 = arith.constant 0 : i32
    %c0_i32_1 = arith.constant 0 : i32
    return %c0_i32, %c0_i32_0 : i32, i32
  }
  func.func @transform_2(%arg0: i32) -> (i32, i32) {
    %c0_i32 = arith.constant 0 : i32
    %c0_i32_0 = arith.constant 0 : i32
    %c0_i32_1 = arith.constant 0 : i32
    return %c0_i32, %c0_i32_0 : i32, i32
  }
  func.func @transform_3(%arg0: i32) -> (i32, i32) {
    %c0_i32 = arith.constant 0 : i32
    %c0_i32_0 = arith.constant 0 : i32
    %c0_i32_1 = arith.constant 0 : i32
    return %c0_i32, %c0_i32_0 : i32, i32
  }
  func.func @transform_4(%arg0: i32) -> (i32, i32) {
    %c0_i32 = arith.constant 0 : i32
    %c0_i32_0 = arith.constant 0 : i32
    %c0_i32_1 = arith.constant 0 : i32
    return %c0_i32, %c0_i32_0 : i32, i32
  }
  func.func @transform_5(%arg0: i32) -> (i32, i32) {
    %c0_i32 = arith.constant 0 : i32
    %c0_i32_0 = arith.constant 0 : i32
    %c0_i32_1 = arith.constant 0 : i32
    return %c0_i32, %c0_i32_0 : i32, i32
  }
  func.func @transform_6(%arg0: i32) -> (i32, i32) {
    %c0_i32 = arith.constant 0 : i32
    %c0_i32_0 = arith.constant 0 : i32
    %c0_i32_1 = arith.constant 0 : i32
    return %c0_i32, %c0_i32_0 : i32, i32
  }
  func.func @transform_7(%arg0: i32) -> (i32, i32) {
    %c0_i32 = arith.constant 0 : i32
    %c0_i32_0 = arith.constant 0 : i32
    return %arg0, %c0_i32 : i32, i32
  }
}

</mosaic_0001>

<bundles_post_ra>
// kernel: tpu_custom_call.1
= control target key start
LH: loop header
LB: loop body
LE: loop exit
PB: predicated region body
PF: predicated region fallthrough
CT: control target
= control target key end

     0   :  { %12 = vsyncpa [#allocation3], 0  ;;  %s931_s0 = inlined_call_operand.hbm [shape: f32[128,128], index: 0, kind: input, shape index: {}]   ;;  %s932_s1 = inlined_call_operand.hbm [shape: bf16[128,128], index: 1, kind: input, shape index: {}]   ;;  %s933_s2 = inlined_call_operand.vmem [shape: f32[1,128], index: 2, kind: input, shape index: {}]   ;;  %s934_s3 = inlined_call_operand.hbm [shape: bf16[128,128], index: 3, kind: input, shape index: {}]   ;;  %s935_s4 = inlined_call_operand.vmem [shape: f32[1,128], index: 4, kind: input, shape index: {}]   ;;  %s936_s5 = inlined_call_operand.hbm [shape: bf16[128,128], index: 5, kind: input, shape index: {}]   ;;  %s937_s6 = inlined_call_operand.vmem [shape: f32[1,128], index: 6, kind: input, shape index: {}]   ;;  %s938_s7 = inlined_call_operand.hbm [shape: f32[128,128], index: 7, kind: output, shape index: {}]  }
   0x1   :  { %13 = vsyncpa [#allocation6], 0 }
   0x2   :  { %14 = vsyncpa [#allocation9], 0  ;;  %s33_s26 = sshll.u32 %s932_s1, 4  ;;  %s34_s26 = int_to_ptr.hbm [resolvable:$true] %s33_s26 }
   0x3   :  { %15 = vsyncpa [#allocation4], 0  ;;  %s834_s27 = smov [#allocation5]   ;;  %s20_s8 = sshll.u32 %s931_s0, 4  ;;  %s21_s8 = int_to_ptr.hbm [resolvable:$true] %s20_s8 }
   0x4   :  { %s35_s28 = sshll.u32 %s834_s27, 4  ;;  %s835_s9 = smov 64   ;;  %s36_s28 = int_to_ptr.vmem [resolvable:$true] %s35_s28 }
   0x5   :  { %s836_s10 = smov 4   ;;  %s837_s11 = smov [#allocation2]  }
   0x6   :  { %41 = dma.hbm_to_vmem [thread:$0]  %s34_s26, 1024, %s36_s28, [#allocation6], %s835_s9, %s835_s9, %s836_s10  }
   0x7   :  { %s22_s12 = sshll.u32 %s837_s11, 4  ;;  %s838_s13 = smov 128   ;;  %s23_s12 = int_to_ptr.vmem [resolvable:$true] %s22_s12 }
   0x8   :  { %s839_s14 = smov 8   ;;  %s48_s16 = sshll.u32 %s934_s3, 4  ;;  %s49_s16 = int_to_ptr.hbm [resolvable:$true] %s48_s16 }
   0x9   :  { %28 = dma.hbm_to_vmem [thread:$0]  %s21_s8, 2048, %s23_s12, [#allocation3], %s838_s13, %s838_s13, %s839_s14  }
   0xa   :  { %s840_s17 = smov [#allocation7]   ;;  %s63_s20 = sshll.u32 %s936_s5, 4  ;;  %s64_s20 = int_to_ptr.hbm [resolvable:$true] %s63_s20 }
   0xb   :  { %s50_s0 = sshll.u32 %s840_s17, 4  ;;  %s841_s21 = smov [#allocation8]   ;;  %s51_s0 = int_to_ptr.vmem [resolvable:$true] %s50_s0 }
   0xc   :  { %56 = dma.hbm_to_vmem [thread:$0]  %s49_s16, 1024, %s51_s0, [#allocation6], %s835_s9, %s835_s9, %s836_s10  }
   0xd   :  { %s65_s22 = sshll.u32 %s841_s21, 4  ;;  %s66_s22 = int_to_ptr.vmem [resolvable:$true] %s65_s22 }
   0xe   :  { %71 = dma.hbm_to_vmem [thread:$0]  %s64_s20, 1024, %s66_s22, [#allocation9], %s835_s9, %s835_s9, %s836_s10  }
   0xf   :  { %826 = dma.done.wait [#allocation3], 2048  }
  0x10   :  { %827 = vsyncadd [#allocation3], 4294965248 }
  0x11   :  { %828 = dma.done.wait [#allocation6], 2048  }
  0x12   :  { %829 = vsyncadd [#allocation6], 4294965248 }
  0x13   :  { %830 = dma.done.wait [#allocation9], 1024  }
  0x14   :  { %831 = vsyncadd [#allocation9], 4294966272  ;;  %v653_v0 = vld [vmem:[#allocation5 + $0x38] sm:$0xff]  ;;  %v652_v1 = vld [vmem:[#allocation5 + $0x30] sm:$0xff]  ;;  %s535_s28 = sshll.u32 %s938_s7, 4  ;;  %s536_s28 = int_to_ptr.hbm [resolvable:$true] %s535_s28 }
  0x15   :  { %182 = vmatpush.bf16.msra.mxu0 %v653_v0  ;;  %670 = vmatpush.bf16.msra.mxu3 %v653_v0  ;;  %v651_v2 = vld [vmem:[#allocation5 + $0x28] sm:$0xff]  ;;  %v650_v3 = vld [vmem:[#allocation5 + $0x20] sm:$0xff]  ;;  %v649_v4 = vld [vmem:[#allocation5 + $0x18] sm:$0xff] }
  0x16   :  { %v648_v5 = vld [vmem:[#allocation5 + $0x10] sm:$0xff]  ;;  %v647_v6 = vld [vmem:[#allocation5 + $0x8] sm:$0xff]  ;;  %v646_v7 = vld [vmem:[#allocation5] sm:$0xff] }
  0x17   :  { %v90_v8 = vld [vmem:[#allocation2] sm:$0xff]  ;;  %v91_v9 = vld [vmem:[#allocation2 + $0x8] sm:$0xff]  ;;  %v92_v14 = vld [vmem:[#allocation2 + $0x10] sm:$0xff] }
  0x18   :  { %v102_v10 = vld [vmem:[#allocation2 + $0x60] sm:$0xff]  ;;  %v103_v11 = vld [vmem:[#allocation2 + $0x68] sm:$0xff]  ;;  %v106_v12 = vpack.c.bf16 %v91_v9, %v90_v8  ;;  %v93_v15 = vld [vmem:[#allocation2 + $0x18] sm:$0xff] }
  0x19   :  { %183 = vmatpush.bf16.msra.mxu0 %v652_v1  ;;  %671 = vmatpush.bf16.msra.mxu3 %v652_v1  ;;  %v112_v13 = vpack.c.bf16 %v103_v11, %v102_v10  ;;  %v104_v16 = vld [vmem:[#allocation2 + $0x70] sm:$0xff]  ;;  %v105_v17 = vld [vmem:[#allocation2 + $0x78] sm:$0xff]  ;;  %v107_v18 = vpack.c.bf16 %v93_v15, %v92_v14  ;;  %v94_v20 = vld [vmem:[#allocation2 + $0x20] sm:$0xff] }
  0x1a   :  { %v113_v19 = vpack.c.bf16 %v105_v17, %v104_v16  ;;  %v95_v21 = vld [vmem:[#allocation2 + $0x28] sm:$0xff]  ;;  %v96_v23 = vld [vmem:[#allocation2 + $0x30] sm:$0xff]  ;;  %v97_v24 = vld [vmem:[#allocation2 + $0x38] sm:$0xff] }
  0x1b   :  { %v108_v22 = vpack.c.bf16 %v95_v21, %v94_v20  ;;  %v109_v25 = vpack.c.bf16 %v97_v24, %v96_v23  ;;  %v661_v26 = vld [vmem:[#allocation7 + $0x38] sm:$0xff]  ;;  %v660_v27 = vld [vmem:[#allocation7 + $0x30] sm:$0xff]  ;;  %v659_v28 = vld [vmem:[#allocation7 + $0x28] sm:$0xff] }
  0x1c   :  { %323 = vmatpush.bf16.msra.mxu1 %v661_v26  ;;  %v98_v29 = vld [vmem:[#allocation2 + $0x40] sm:$0xff]  ;;  %v99_v30 = vld [vmem:[#allocation2 + $0x48] sm:$0xff]  ;;  %v100_v33 = vld [vmem:[#allocation2 + $0x50] sm:$0xff] }
  0x1d   :  { %184 = vmatpush.bf16.msra.mxu0 %v651_v2  ;;  %672 = vmatpush.bf16.msra.mxu3 %v651_v2  ;;  %v658_v31 = vld [vmem:[#allocation7 + $0x20] sm:$0xff]  ;;  %v110_v32 = vpack.c.bf16 %v99_v30, %v98_v29  ;;  %v101_v34 = vld [vmem:[#allocation2 + $0x58] sm:$0xff]  ;;  %v656_v37 = vld [vmem:[#allocation7 + $0x10] sm:$0xff] }
  0x1e   :  { %v111_v35 = vpack.c.bf16 %v101_v34, %v100_v33  ;;  %v657_v36 = vld [vmem:[#allocation7 + $0x18] sm:$0xff]  ;;  %v655_v38 = vld [vmem:[#allocation7 + $0x8] sm:$0xff]  ;;  %v654_v39 = vld [vmem:[#allocation7] sm:$0xff] }
  0x1f   :  { %v901_v41 = vld [vmem:[%s933_s2] ss:$0 sm:$0xff]  ;;  %v668_v21 = vld [vmem:[#allocation8 + $0x30] sm:$0xff] }
  0x20   :  { %324 = vmatpush.bf16.msra.mxu1 %v660_v27 }
  0x21   :  { %185 = vmatpush.bf16.msra.mxu0 %v650_v3  ;;  %673 = vmatpush.bf16.msra.mxu3 %v650_v3 }
  0x24   :  { %325 = vmatpush.bf16.msra.mxu1 %v659_v28 }
  0x25   :  { %186 = vmatpush.bf16.msra.mxu0 %v649_v4  ;;  %674 = vmatpush.bf16.msra.mxu3 %v649_v4 }
  0x28   :  { %326 = vmatpush.bf16.msra.mxu1 %v658_v31 }
  0x29   :  { %187 = vmatpush.bf16.msra.mxu0 %v648_v5  ;;  %675 = vmatpush.bf16.msra.mxu3 %v648_v5 }
  0x2c   :  { %327 = vmatpush.bf16.msra.mxu1 %v657_v36 }
  0x2d   :  { %188 = vmatpush.bf16.msra.mxu0 %v647_v6  ;;  %676 = vmatpush.bf16.msra.mxu3 %v647_v6 }
  0x30   :  { %328 = vmatpush.bf16.msra.mxu1 %v656_v37 }
  0x31   :  { %189 = vmatpush.bf16.msra.mxu0 %v646_v7  ;;  %677 = vmatpush.bf16.msra.mxu3 %v646_v7 }
  0x34   :  { %190 = vmatmul.bf16.vlgmr.msra.gmra.mxu0 %v106_v12  ;;  %220 = vmatmul.bf16.vlgmr.msra.gmra.mxu3 %v112_v13 }
  0x35   :  { %678 = vmatpush.bf16.msrb.mxu3 %v661_v26  ;;  %329 = vmatpush.bf16.msra.mxu1 %v655_v38  ;;  %v666_v26 = vld [vmem:[#allocation8 + $0x20] sm:$0xff] }
  0x39   :  { %679 = vmatpush.bf16.msrb.mxu3 %v660_v27  ;;  %330 = vmatpush.bf16.msra.mxu1 %v654_v39 }
  0x3d   :  { %680 = vmatpush.bf16.msrb.mxu3 %v659_v28 }
  0x41   :  { %681 = vmatpush.bf16.msrb.mxu3 %v658_v31 }
  0x44   :  { %195 = vmatmul.bf16.gmra.mxu0 %v107_v18  ;;  %225 = vmatmul.bf16.gmra.mxu3 %v113_v19  ;;  %v669_v19 = vld [vmem:[#allocation8 + $0x38] sm:$0xff] }
  0x45   :  { %682 = vmatpush.bf16.msrb.mxu3 %v657_v36  ;;  %464 = vmatpush.bf16.msra.mxu2 %v669_v19 }
  0x49   :  { %683 = vmatpush.bf16.msrb.mxu3 %v656_v37  ;;  %465 = vmatpush.bf16.msra.mxu2 %v668_v21  ;;  %v665_v37 = vld [vmem:[#allocation8 + $0x18] sm:$0xff] }
  0x4d   :  { %684 = vmatpush.bf16.msrb.mxu3 %v655_v38  ;;  %v664_v38 = vld [vmem:[#allocation8 + $0x10] sm:$0xff] }
  0x51   :  { %685 = vmatpush.bf16.msrb.mxu3 %v654_v39  ;;  %v663_v39 = vld [vmem:[#allocation8 + $0x8] sm:$0xff] }
  0x54   :  { %200 = vmatmul.bf16.gmra.mxu0 %v108_v22  ;;  %v667_v22 = vld [vmem:[#allocation8 + $0x28] sm:$0xff] }
  0x55   :  { %686 = vmatpush.bf16.msra.mxu3 %v669_v19  ;;  %466 = vmatpush.bf16.msra.mxu2 %v667_v22 }
  0x59   :  { %687 = vmatpush.bf16.msra.mxu3 %v668_v21  ;;  %467 = vmatpush.bf16.msra.mxu2 %v666_v26 }
  0x5d   :  { %688 = vmatpush.bf16.msra.mxu3 %v667_v22  ;;  %468 = vmatpush.bf16.msra.mxu2 %v665_v37 }
  0x61   :  { %689 = vmatpush.bf16.msra.mxu3 %v666_v26  ;;  %469 = vmatpush.bf16.msra.mxu2 %v664_v38 }
  0x64   :  { %205 = vmatmul.bf16.gmra.mxu0 %v109_v25 }
  0x65   :  { %690 = vmatpush.bf16.msra.mxu3 %v665_v37  ;;  %470 = vmatpush.bf16.msra.mxu2 %v663_v39 }
  0x69   :  { %691 = vmatpush.bf16.msra.mxu3 %v664_v38 }
  0x6d   :  { %692 = vmatpush.bf16.msra.mxu3 %v663_v39 }
  0x74   :  { %210 = vmatmul.bf16.gmra.mxu0 %v110_v32 }
  0x84   :  { %215 = vmatmul.bf16.gmra.mxu0 %v111_v35 }
  0xb1   :  { %v191_v40 = vpop.f32.mrf.mxu0 }
  0xb2   :  { %v192_v43 = vadd.f32 %v901_v41, %v191_v40  ;;  %v662_v40 = vld [vmem:[#allocation8] sm:$0xff] }
  0xb3   :  { %471 = vmatpush.bf16.msra.mxu2 %v662_v40  ;;  %693 = vmatpush.bf16.msra.mxu3 %v662_v40 }
  0xb4   :  { %v231_v46 = vmax.f32 %v192_v43, 0.0 }
  0xb7   :  { %v221_v42 = vpop.f32.mrf.mxu3 }
  0xb8   :  { %v222_v48 = vadd.f32 %v901_v41, %v221_v42 }
  0xb9   :  { %v193_v44 = vpop.f32.mrf.mxu0 }
  0xba   :  { %v194_v45 = vadd.f32 %v901_v41, %v193_v44  ;;  %v243_v51 = vmax.f32 %v222_v48, 0.0 }
  0xbc   :  { %v232_v47 = vmax.f32 %v194_v45, 0.0 }
  0xbe   :  { %v247_v49 = vpack.c.bf16 %v232_v47, %v231_v46 }
  0xbf   :  { %v223_v50 = vpop.f32.mrf.mxu3 }
  0xc0   :  { %331 = vmatmul.bf16.vlgmr.msra.gmra.mxu1 %v247_v49  ;;  %v224_v52 = vadd.f32 %v901_v41, %v223_v50 }
  0xc1   :  { %v196_v53 = vpop.f32.mrf.mxu0 }
  0xc2   :  { %v244_v54 = vmax.f32 %v224_v52, 0.0  ;;  %v197_v57 = vadd.f32 %v901_v41, %v196_v53 }
  0xc4   :  { %v253_v55 = vpack.c.bf16 %v244_v54, %v243_v51  ;;  %v233_v60 = vmax.f32 %v197_v57, 0.0 }
  0xc6   :  { %361 = vmatmul.bf16.vlgmr.msrb.gmra.mxu3 %v253_v55 }
  0xc7   :  { %v226_v56 = vpop.f32.mrf.mxu3 }
  0xc8   :  { %v227_v62 = vadd.f32 %v901_v41, %v226_v56 }
  0xc9   :  { %v198_v58 = vpop.f32.mrf.mxu0 }
  0xca   :  { %v199_v59 = vadd.f32 %v901_v41, %v198_v58  ;;  %v245_v1 = vmax.f32 %v227_v62, 0.0 }
  0xcc   :  { %v234_v61 = vmax.f32 %v199_v59, 0.0 }
  0xce   :  { %v248_v63 = vpack.c.bf16 %v234_v61, %v233_v60 }
  0xcf   :  { %v228_v0 = vpop.f32.mrf.mxu3 }
  0xd0   :  { %336 = vmatmul.bf16.gmra.mxu1 %v248_v63  ;;  %v229_v2 = vadd.f32 %v901_v41, %v228_v0 }
  0xd1   :  { %v201_v3 = vpop.f32.mrf.mxu0 }
  0xd2   :  { %v246_v4 = vmax.f32 %v229_v2, 0.0  ;;  %v202_v6 = vadd.f32 %v901_v41, %v201_v3 }
  0xd4   :  { %v254_v5 = vpack.c.bf16 %v246_v4, %v245_v1  ;;  %v235_v9 = vmax.f32 %v202_v6, 0.0 }
  0xd6   :  { %366 = vmatmul.bf16.gmra.mxu3 %v254_v5 }
  0xd9   :  { %v203_v7 = vpop.f32.mrf.mxu0 }
  0xda   :  { %v204_v8 = vadd.f32 %v901_v41, %v203_v7 }
  0xdc   :  { %v236_v10 = vmax.f32 %v204_v8, 0.0 }
  0xde   :  { %v249_v11 = vpack.c.bf16 %v236_v10, %v235_v9 }
  0xe0   :  { %341 = vmatmul.bf16.gmra.mxu1 %v249_v11 }
  0xe1   :  { %v206_v12 = vpop.f32.mrf.mxu0 }
  0xe2   :  { %v207_v13 = vadd.f32 %v901_v41, %v206_v12 }
  0xe4   :  { %v237_v16 = vmax.f32 %v207_v13, 0.0 }
  0xe9   :  { %v208_v14 = vpop.f32.mrf.mxu0 }
  0xea   :  { %v209_v15 = vadd.f32 %v901_v41, %v208_v14 }
  0xec   :  { %v238_v17 = vmax.f32 %v209_v15, 0.0 }
  0xee   :  { %v250_v18 = vpack.c.bf16 %v238_v17, %v237_v16 }
  0xf0   :  { %346 = vmatmul.bf16.gmra.mxu1 %v250_v18 }
  0xf1   :  { %v211_v20 = vpop.f32.mrf.mxu0 }
  0xf2   :  { %v212_v23 = vadd.f32 %v901_v41, %v211_v20 }
  0xf4   :  { %v239_v27 = vmax.f32 %v212_v23, 0.0 }
  0xf9   :  { %v213_v24 = vpop.f32.mrf.mxu0 }
  0xfa   :  { %v214_v25 = vadd.f32 %v901_v41, %v213_v24 }
  0xfc   :  { %v240_v28 = vmax.f32 %v214_v25, 0.0 }
  0xfe   :  { %v251_v29 = vpack.c.bf16 %v240_v28, %v239_v27 }
 0x100   :  { %351 = vmatmul.bf16.gmra.mxu1 %v251_v29 }
 0x101   :  { %v216_v30 = vpop.f32.mrf.mxu0 }
 0x102   :  { %v217_v31 = vadd.f32 %v901_v41, %v216_v30 }
 0x104   :  { %v241_v34 = vmax.f32 %v217_v31, 0.0 }
 0x109   :  { %v218_v32 = vpop.f32.mrf.mxu0 }
 0x10a   :  { %v219_v33 = vadd.f32 %v901_v41, %v218_v32  ;;  %v704_v41 = vld [vmem:[%s935_s4] ss:$0 sm:$0xff] }
 0x10c   :  { %v242_v35 = vmax.f32 %v219_v33, 0.0 }
 0x10e   :  { %v252_v36 = vpack.c.bf16 %v242_v35, %v241_v34  ;;  %v705_v34 = vld [vmem:[%s937_s6] ss:$0 sm:$0xff]  ;;  %s842_s6 = smov [#allocation10]  }
 0x10f   :  { %s533_s25 = sshll.u32 %s842_s6, 4  ;;  %s534_s25 = int_to_ptr.vmem [resolvable:$true] %s533_s25 }
 0x110   :  { %356 = vmatmul.bf16.gmra.mxu1 %v252_v36 }
 0x13d   :  { %v332_v42 = vpop.f32.mrf.mxu1 }
 0x13e   :  { %v333_v43 = vadd.f32 %v704_v41, %v332_v42 }
 0x140   :  { %v372_v46 = vmax.f32 %v333_v43, 0.0 }
 0x145   :  { %v334_v44 = vpop.f32.mrf.mxu1 }
 0x146   :  { %v335_v45 = vadd.f32 %v704_v41, %v334_v44 }
 0x148   :  { %v373_v47 = vmax.f32 %v335_v45, 0.0 }
 0x149   :  { %v362_v48 = vpop.f32.mrf.mxu3 }
 0x14a   :  { %v388_v49 = vpack.c.bf16 %v373_v47, %v372_v46  ;;  %v363_v51 = vadd.f32 %v704_v41, %v362_v48 }
 0x14c   :  { %472 = vmatmul.bf16.vlgmr.msra.gmra.mxu2 %v388_v49  ;;  %v384_v53 = vmax.f32 %v363_v51, 0.0 }
 0x14d   :  { %v337_v50 = vpop.f32.mrf.mxu1 }
 0x14e   :  { %v338_v55 = vadd.f32 %v704_v41, %v337_v50 }
 0x150   :  { %v374_v60 = vmax.f32 %v338_v55, 0.0 }
 0x151   :  { %v364_v52 = vpop.f32.mrf.mxu3 }
 0x152   :  { %v365_v54 = vadd.f32 %v704_v41, %v364_v52 }
 0x154   :  { %v385_v56 = vmax.f32 %v365_v54, 0.0 }
 0x155   :  { %v339_v57 = vpop.f32.mrf.mxu1 }
 0x156   :  { %v340_v58 = vadd.f32 %v704_v41, %v339_v57  ;;  %v394_v59 = vpack.c.bf16 %v385_v56, %v384_v53 }
 0x158   :  { %v375_v61 = vmax.f32 %v340_v58, 0.0  ;;  %502 = vmatmul.bf16.vlgmr.msra.gmra.mxu3 %v394_v59 }
 0x159   :  { %v367_v62 = vpop.f32.mrf.mxu3 }
 0x15a   :  { %v389_v63 = vpack.c.bf16 %v375_v61, %v374_v60  ;;  %v368_v1 = vadd.f32 %v704_v41, %v367_v62 }
 0x15c   :  { %477 = vmatmul.bf16.gmra.mxu2 %v389_v63  ;;  %v386_v3 = vmax.f32 %v368_v1, 0.0 }
 0x15d   :  { %v342_v0 = vpop.f32.mrf.mxu1 }
 0x15e   :  { %v343_v5 = vadd.f32 %v704_v41, %v342_v0 }
 0x160   :  { %v376_v10 = vmax.f32 %v343_v5, 0.0 }
 0x161   :  { %v369_v2 = vpop.f32.mrf.mxu3 }
 0x162   :  { %v370_v4 = vadd.f32 %v704_v41, %v369_v2 }
 0x164   :  { %v387_v6 = vmax.f32 %v370_v4, 0.0 }
 0x165   :  { %v344_v7 = vpop.f32.mrf.mxu1 }
 0x166   :  { %v345_v8 = vadd.f32 %v704_v41, %v344_v7  ;;  %v395_v9 = vpack.c.bf16 %v387_v6, %v386_v3 }
 0x168   :  { %v377_v11 = vmax.f32 %v345_v8, 0.0  ;;  %507 = vmatmul.bf16.gmra.mxu3 %v395_v9 }
 0x16a   :  { %v390_v12 = vpack.c.bf16 %v377_v11, %v376_v10 }
 0x16c   :  { %482 = vmatmul.bf16.gmra.mxu2 %v390_v12 }
 0x16d   :  { %v347_v13 = vpop.f32.mrf.mxu1 }
 0x16e   :  { %v348_v14 = vadd.f32 %v704_v41, %v347_v13 }
 0x170   :  { %v378_v17 = vmax.f32 %v348_v14, 0.0 }
 0x175   :  { %v349_v15 = vpop.f32.mrf.mxu1 }
 0x176   :  { %v350_v16 = vadd.f32 %v704_v41, %v349_v15 }
 0x178   :  { %v379_v18 = vmax.f32 %v350_v16, 0.0 }
 0x17a   :  { %v391_v19 = vpack.c.bf16 %v379_v18, %v378_v17 }
 0x17c   :  { %487 = vmatmul.bf16.gmra.mxu2 %v391_v19 }
 0x17d   :  { %v352_v20 = vpop.f32.mrf.mxu1 }
 0x17e   :  { %v353_v21 = vadd.f32 %v704_v41, %v352_v20 }
 0x180   :  { %v380_v24 = vmax.f32 %v353_v21, 0.0 }
 0x185   :  { %v354_v22 = vpop.f32.mrf.mxu1 }
 0x186   :  { %v355_v23 = vadd.f32 %v704_v41, %v354_v22 }
 0x188   :  { %v381_v25 = vmax.f32 %v355_v23, 0.0 }
 0x18a   :  { %v392_v26 = vpack.c.bf16 %v381_v25, %v380_v24 }
 0x18c   :  { %492 = vmatmul.bf16.gmra.mxu2 %v392_v26 }
 0x18d   :  { %v357_v27 = vpop.f32.mrf.mxu1 }
 0x18e   :  { %v358_v28 = vadd.f32 %v704_v41, %v357_v27 }
 0x190   :  { %v382_v31 = vmax.f32 %v358_v28, 0.0 }
 0x195   :  { %v359_v29 = vpop.f32.mrf.mxu1 }
 0x196   :  { %v360_v30 = vadd.f32 %v704_v41, %v359_v29 }
 0x198   :  { %v383_v32 = vmax.f32 %v360_v30, 0.0 }
 0x19a   :  { %v393_v33 = vpack.c.bf16 %v383_v32, %v382_v31 }
 0x19c   :  { %497 = vmatmul.bf16.gmra.mxu2 %v393_v33 }
 0x1cf   :  { %v473_v35 = vpop.f32.mrf.mxu2 }
 0x1d0   :  { %v474_v36 = vadd.f32 %v705_v34, %v473_v35 }
 0x1d2   :  { %513 = vst [vmem:[#allocation10] sm:$0xff] %v474_v36 }
 0x1d7   :  { %v475_v37 = vpop.f32.mrf.mxu2 }
 0x1d8   :  { %v476_v38 = vadd.f32 %v705_v34, %v475_v37 }
 0x1da   :  { %514 = vst [vmem:[#allocation10 + $0x8] sm:$0xff] %v476_v38 }
 0x1db   :  { %v503_v39 = vpop.f32.mrf.mxu3 }
 0x1dc   :  { %v504_v40 = vadd.f32 %v705_v34, %v503_v39 }
 0x1de   :  { %525 = vst [vmem:[#allocation10 + $0x60] sm:$0xff] %v504_v40 }
 0x1df   :  { %v478_v42 = vpop.f32.mrf.mxu2 }
 0x1e0   :  { %v479_v43 = vadd.f32 %v705_v34, %v478_v42 }
 0x1e2   :  { %515 = vst [vmem:[#allocation10 + $0x10] sm:$0xff] %v479_v43 }
 0x1e3   :  { %v505_v41 = vpop.f32.mrf.mxu3 }
 0x1e4   :  { %v506_v44 = vadd.f32 %v705_v34, %v505_v41 }
 0x1e6   :  { %526 = vst [vmem:[#allocation10 + $0x68] sm:$0xff] %v506_v44 }
 0x1e7   :  { %v480_v45 = vpop.f32.mrf.mxu2 }
 0x1e8   :  { %v481_v46 = vadd.f32 %v705_v34, %v480_v45 }
 0x1ea   :  { %516 = vst [vmem:[#allocation10 + $0x18] sm:$0xff] %v481_v46 }
 0x1eb   :  { %v508_v47 = vpop.f32.mrf.mxu3 }
 0x1ec   :  { %v509_v48 = vadd.f32 %v705_v34, %v508_v47 }
 0x1ee   :  { %527 = vst [vmem:[#allocation10 + $0x70] sm:$0xff] %v509_v48 }
 0x1ef   :  { %v483_v49 = vpop.f32.mrf.mxu2 }
 0x1f0   :  { %v484_v50 = vadd.f32 %v705_v34, %v483_v49 }
 0x1f2   :  { %517 = vst [vmem:[#allocation10 + $0x20] sm:$0xff] %v484_v50 }
 0x1f3   :  { %v510_v51 = vpop.f32.mrf.mxu3 }
 0x1f4   :  { %v511_v52 = vadd.f32 %v705_v34, %v510_v51 }
 0x1f6   :  { %528 = vst [vmem:[#allocation10 + $0x78] sm:$0xff] %v511_v52 }
 0x1f7   :  { %v485_v53 = vpop.f32.mrf.mxu2 }
 0x1f8   :  { %v486_v54 = vadd.f32 %v705_v34, %v485_v53 }
 0x1fa   :  { %518 = vst [vmem:[#allocation10 + $0x28] sm:$0xff] %v486_v54 }
 0x1ff   :  { %v488_v55 = vpop.f32.mrf.mxu2 }
 0x200   :  { %v489_v56 = vadd.f32 %v705_v34, %v488_v55 }
 0x202   :  { %519 = vst [vmem:[#allocation10 + $0x30] sm:$0xff] %v489_v56 }
 0x207   :  { %v490_v57 = vpop.f32.mrf.mxu2 }
 0x208   :  { %v491_v58 = vadd.f32 %v705_v34, %v490_v57 }
 0x20a   :  { %520 = vst [vmem:[#allocation10 + $0x38] sm:$0xff] %v491_v58 }
 0x20f   :  { %v493_v59 = vpop.f32.mrf.mxu2 }
 0x210   :  { %v494_v60 = vadd.f32 %v705_v34, %v493_v59 }
 0x212   :  { %521 = vst [vmem:[#allocation10 + $0x40] sm:$0xff] %v494_v60 }
 0x217   :  { %v495_v61 = vpop.f32.mrf.mxu2 }
 0x218   :  { %v496_v62 = vadd.f32 %v705_v34, %v495_v61 }
 0x21a   :  { %522 = vst [vmem:[#allocation10 + $0x48] sm:$0xff] %v496_v62 }
 0x21f   :  { %v498_v63 = vpop.f32.mrf.mxu2 }
 0x220   :  { %v499_v0 = vadd.f32 %v705_v34, %v498_v63 }
 0x222   :  { %523 = vst [vmem:[#allocation10 + $0x50] sm:$0xff] %v499_v0 }
 0x227   :  { %v500_v1 = vpop.f32.mrf.mxu2 }
 0x228   :  { %v501_v2 = vadd.f32 %v705_v34, %v500_v1 }
 0x22a   :  { %524 = vst [vmem:[#allocation10 + $0x58] sm:$0xff] %v501_v2 }
 0x22b   :  { %541 = dma.vmem_to_hbm [thread:$0]  %s534_s25, 2048, %s536_s28, [#allocation4], %s838_s13, %s838_s13, %s839_s14  }
 0x22c   :  { %832 = dma.done.wait [#allocation4], 2048  }
 0x22d   :  { %833 = vsyncadd [#allocation4], 4294965248 }
 0x22e   :  { %546 = vsyncpa [#allocation3], 1 }
 0x22f   :  { %547 = vsyncpa [#allocation6], 1 }
 0x230   :  { %548 = vsyncpa [#allocation9], 1 }
 0x231   :  { %549 = vsyncpa [#allocation4], 1 }

// kernel: tpu_custom_call.1
= control target key start
LH: loop header
LB: loop body
LE: loop exit
PB: predicated region body
PF: predicated region fallthrough
CT: control target
= control target key end

     0   :  { %12 = vsyncpa [#allocation3], 0  ;;  %s931_s0 = inlined_call_operand.hbm [shape: f32[128,128], index: 0, kind: input, shape index: {}]   ;;  %s932_s1 = inlined_call_operand.hbm [shape: bf16[128,128], index: 1, kind: input, shape index: {}]   ;;  %s933_s2 = inlined_call_operand.vmem [shape: f32[1,128], index: 2, kind: input, shape index: {}]   ;;  %s934_s3 = inlined_call_operand.hbm [shape: bf16[128,128], index: 3, kind: input, shape index: {}]   ;;  %s935_s4 = inlined_call_operand.vmem [shape: f32[1,128], index: 4, kind: input, shape index: {}]   ;;  %s936_s5 = inlined_call_operand.hbm [shape: bf16[128,128], index: 5, kind: input, shape index: {}]   ;;  %s937_s6 = inlined_call_operand.vmem [shape: f32[1,128], index: 6, kind: input, shape index: {}]   ;;  %s938_s7 = inlined_call_operand.hbm [shape: f32[128,128], index: 7, kind: output, shape index: {}]  }
   0x1   :  { %13 = vsyncpa [#allocation6], 0 }
   0x2   :  { %14 = vsyncpa [#allocation9], 0  ;;  %s33_s26 = sshll.u32 %s932_s1, 4  ;;  %s34_s26 = int_to_ptr.hbm [resolvable:$true] %s33_s26 }
   0x3   :  { %15 = vsyncpa [#allocation4], 0  ;;  %s834_s27 = smov [#allocation5]   ;;  %s20_s8 = sshll.u32 %s931_s0, 4  ;;  %s21_s8 = int_to_ptr.hbm [resolvable:$true] %s20_s8 }
   0x4   :  { %s35_s28 = sshll.u32 %s834_s27, 4  ;;  %s835_s9 = smov 64   ;;  %s36_s28 = int_to_ptr.vmem [resolvable:$true] %s35_s28 }
   0x5   :  { %s836_s10 = smov 4   ;;  %s837_s11 = smov [#allocation2]  }
   0x6   :  { %41 = dma.hbm_to_vmem [thread:$0]  %s34_s26, 1024, %s36_s28, [#allocation6], %s835_s9, %s835_s9, %s836_s10  }
   0x7   :  { %s22_s12 = sshll.u32 %s837_s11, 4  ;;  %s838_s13 = smov 128   ;;  %s23_s12 = int_to_ptr.vmem [resolvable:$true] %s22_s12 }
   0x8   :  { %s839_s14 = smov 8   ;;  %s48_s16 = sshll.u32 %s934_s3, 4  ;;  %s49_s16 = int_to_ptr.hbm [resolvable:$true] %s48_s16 }
   0x9   :  { %28 = dma.hbm_to_vmem [thread:$0]  %s21_s8, 2048, %s23_s12, [#allocation3], %s838_s13, %s838_s13, %s839_s14  }
   0xa   :  { %s840_s17 = smov [#allocation7]   ;;  %s63_s20 = sshll.u32 %s936_s5, 4  ;;  %s64_s20 = int_to_ptr.hbm [resolvable:$true] %s63_s20 }
   0xb   :  { %s50_s0 = sshll.u32 %s840_s17, 4  ;;  %s841_s21 = smov [#allocation8]   ;;  %s51_s0 = int_to_ptr.vmem [resolvable:$true] %s50_s0 }
   0xc   :  { %56 = dma.hbm_to_vmem [thread:$0]  %s49_s16, 1024, %s51_s0, [#allocation6], %s835_s9, %s835_s9, %s836_s10  }
   0xd   :  { %s65_s22 = sshll.u32 %s841_s21, 4  ;;  %s66_s22 = int_to_ptr.vmem [resolvable:$true] %s65_s22 }
   0xe   :  { %71 = dma.hbm_to_vmem [thread:$0]  %s64_s20, 1024, %s66_s22, [#allocation9], %s835_s9, %s835_s9, %s836_s10  }
   0xf   :  { %826 = dma.done.wait [#allocation3], 2048  }
  0x10   :  { %827 = vsyncadd [#allocation3], 4294965248 }
  0x11   :  { %828 = dma.done.wait [#allocation6], 2048  }
  0x12   :  { %829 = vsyncadd [#allocation6], 4294965248 }
  0x13   :  { %830 = dma.done.wait [#allocation9], 1024  }
  0x14   :  { %831 = vsyncadd [#allocation9], 4294966272  ;;  %v653_v0 = vld [vmem:[#allocation5 + $0x38] sm:$0xff]  ;;  %v652_v1 = vld [vmem:[#allocation5 + $0x30] sm:$0xff]  ;;  %s535_s28 = sshll.u32 %s938_s7, 4  ;;  %s536_s28 = int_to_ptr.hbm [resolvable:$true] %s535_s28 }
  0x15   :  { %182 = vmatpush.bf16.msra.mxu0 %v653_v0  ;;  %670 = vmatpush.bf16.msra.mxu3 %v653_v0  ;;  %v651_v2 = vld [vmem:[#allocation5 + $0x28] sm:$0xff]  ;;  %v650_v3 = vld [vmem:[#allocation5 + $0x20] sm:$0xff]  ;;  %v649_v4 = vld [vmem:[#allocation5 + $0x18] sm:$0xff] }
  0x16   :  { %v648_v5 = vld [vmem:[#allocation5 + $0x10] sm:$0xff]  ;;  %v647_v6 = vld [vmem:[#allocation5 + $0x8] sm:$0xff]  ;;  %v646_v7 = vld [vmem:[#allocation5] sm:$0xff] }
  0x17   :  { %v90_v8 = vld [vmem:[#allocation2] sm:$0xff]  ;;  %v91_v9 = vld [vmem:[#allocation2 + $0x8] sm:$0xff]  ;;  %v92_v14 = vld [vmem:[#allocation2 + $0x10] sm:$0xff] }
  0x18   :  { %v102_v10 = vld [vmem:[#allocation2 + $0x60] sm:$0xff]  ;;  %v103_v11 = vld [vmem:[#allocation2 + $0x68] sm:$0xff]  ;;  %v106_v12 = vpack.c.bf16 %v91_v9, %v90_v8  ;;  %v93_v15 = vld [vmem:[#allocation2 + $0x18] sm:$0xff] }
  0x19   :  { %183 = vmatpush.bf16.msra.mxu0 %v652_v1  ;;  %671 = vmatpush.bf16.msra.mxu3 %v652_v1  ;;  %v112_v13 = vpack.c.bf16 %v103_v11, %v102_v10  ;;  %v104_v16 = vld [vmem:[#allocation2 + $0x70] sm:$0xff]  ;;  %v105_v17 = vld [vmem:[#allocation2 + $0x78] sm:$0xff]  ;;  %v107_v18 = vpack.c.bf16 %v93_v15, %v92_v14  ;;  %v94_v20 = vld [vmem:[#allocation2 + $0x20] sm:$0xff] }
  0x1a   :  { %v113_v19 = vpack.c.bf16 %v105_v17, %v104_v16  ;;  %v95_v21 = vld [vmem:[#allocation2 + $0x28] sm:$0xff]  ;;  %v96_v23 = vld [vmem:[#allocation2 + $0x30] sm:$0xff]  ;;  %v97_v24 = vld [vmem:[#allocation2 + $0x38] sm:$0xff] }
  0x1b   :  { %v108_v22 = vpack.c.bf16 %v95_v21, %v94_v20  ;;  %v109_v25 = vpack.c.bf16 %v97_v24, %v96_v23  ;;  %v661_v26 = vld [vmem:[#allocation7 + $0x38] sm:$0xff]  ;;  %v660_v27 = vld [vmem:[#allocation7 + $0x30] sm:$0xff]  ;;  %v659_v28 = vld [vmem:[#allocation7 + $0x28] sm:$0xff] }
  0x1c   :  { %323 = vmatpush.bf16.msra.mxu1 %v661_v26  ;;  %v98_v29 = vld [vmem:[#allocation2 + $0x40] sm:$0xff]  ;;  %v99_v30 = vld [vmem:[#allocation2 + $0x48] sm:$0xff]  ;;  %v100_v33 = vld [vmem:[#allocation2 + $0x50] sm:$0xff] }
  0x1d   :  { %184 = vmatpush.bf16.msra.mxu0 %v651_v2  ;;  %672 = vmatpush.bf16.msra.mxu3 %v651_v2  ;;  %v658_v31 = vld [vmem:[#allocation7 + $0x20] sm:$0xff]  ;;  %v110_v32 = vpack.c.bf16 %v99_v30, %v98_v29  ;;  %v101_v34 = vld [vmem:[#allocation2 + $0x58] sm:$0xff]  ;;  %v656_v37 = vld [vmem:[#allocation7 + $0x10] sm:$0xff] }
  0x1e   :  { %v111_v35 = vpack.c.bf16 %v101_v34, %v100_v33  ;;  %v657_v36 = vld [vmem:[#allocation7 + $0x18] sm:$0xff]  ;;  %v655_v38 = vld [vmem:[#allocation7 + $0x8] sm:$0xff]  ;;  %v654_v39 = vld [vmem:[#allocation7] sm:$0xff] }
  0x1f   :  { %v901_v41 = vld [vmem:[%s933_s2] ss:$0 sm:$0xff]  ;;  %v668_v21 = vld [vmem:[#allocation8 + $0x30] sm:$0xff] }
  0x20   :  { %324 = vmatpush.bf16.msra.mxu1 %v660_v27 }
  0x21   :  { %185 = vmatpush.bf16.msra.mxu0 %v650_v3  ;;  %673 = vmatpush.bf16.msra.mxu3 %v650_v3 }
  0x24   :  { %325 = vmatpush.bf16.msra.mxu1 %v659_v28 }
  0x25   :  { %186 = vmatpush.bf16.msra.mxu0 %v649_v4  ;;  %674 = vmatpush.bf16.msra.mxu3 %v649_v4 }
  0x28   :  { %326 = vmatpush.bf16.msra.mxu1 %v658_v31 }
  0x29   :  { %187 = vmatpush.bf16.msra.mxu0 %v648_v5  ;;  %675 = vmatpush.bf16.msra.mxu3 %v648_v5 }
  0x2c   :  { %327 = vmatpush.bf16.msra.mxu1 %v657_v36 }
  0x2d   :  { %188 = vmatpush.bf16.msra.mxu0 %v647_v6  ;;  %676 = vmatpush.bf16.msra.mxu3 %v647_v6 }
  0x30   :  { %328 = vmatpush.bf16.msra.mxu1 %v656_v37 }
  0x31   :  { %189 = vmatpush.bf16.msra.mxu0 %v646_v7  ;;  %677 = vmatpush.bf16.msra.mxu3 %v646_v7 }
  0x34   :  { %190 = vmatmul.bf16.vlgmr.msra.gmra.mxu0 %v106_v12  ;;  %220 = vmatmul.bf16.vlgmr.msra.gmra.mxu3 %v112_v13 }
  0x35   :  { %678 = vmatpush.bf16.msrb.mxu3 %v661_v26  ;;  %329 = vmatpush.bf16.msra.mxu1 %v655_v38  ;;  %v666_v26 = vld [vmem:[#allocation8 + $0x20] sm:$0xff] }
  0x39   :  { %679 = vmatpush.bf16.msrb.mxu3 %v660_v27  ;;  %330 = vmatpush.bf16.msra.mxu1 %v654_v39 }
  0x3d   :  { %680 = vmatpush.bf16.msrb.mxu3 %v659_v28 }
  0x41   :  { %681 = vmatpush.bf16.msrb.mxu3 %v658_v31 }
  0x44   :  { %195 = vmatmul.bf16.gmra.mxu0 %v107_v18  ;;  %225 = vmatmul.bf16.gmra.mxu3 %v113_v19  ;;  %v669_v19 = vld [vmem:[#allocation8 + $0x38] sm:$0xff] }
  0x45   :  { %682 = vmatpush.bf16.msrb.mxu3 %v657_v36  ;;  %464 = vmatpush.bf16.msra.mxu2 %v669_v19 }
  0x49   :  { %683 = vmatpush.bf16.msrb.mxu3 %v656_v37  ;;  %465 = vmatpush.bf16.msra.mxu2 %v668_v21  ;;  %v665_v37 = vld [vmem:[#allocation8 + $0x18] sm:$0xff] }
  0x4d   :  { %684 = vmatpush.bf16.msrb.mxu3 %v655_v38  ;;  %v664_v38 = vld [vmem:[#allocation8 + $0x10] sm:$0xff] }
  0x51   :  { %685 = vmatpush.bf16.msrb.mxu3 %v654_v39  ;;  %v663_v39 = vld [vmem:[#allocation8 + $0x8] sm:$0xff] }
  0x54   :  { %200 = vmatmul.bf16.gmra.mxu0 %v108_v22  ;;  %v667_v22 = vld [vmem:[#allocation8 + $0x28] sm:$0xff] }
  0x55   :  { %686 = vmatpush.bf16.msra.mxu3 %v669_v19  ;;  %466 = vmatpush.bf16.msra.mxu2 %v667_v22 }
  0x59   :  { %687 = vmatpush.bf16.msra.mxu3 %v668_v21  ;;  %467 = vmatpush.bf16.msra.mxu2 %v666_v26 }
  0x5d   :  { %688 = vmatpush.bf16.msra.mxu3 %v667_v22  ;;  %468 = vmatpush.bf16.msra.mxu2 %v665_v37 }
  0x61   :  { %689 = vmatpush.bf16.msra.mxu3 %v666_v26  ;;  %469 = vmatpush.bf16.msra.mxu2 %v664_v38 }
  0x64   :  { %205 = vmatmul.bf16.gmra.mxu0 %v109_v25 }
  0x65   :  { %690 = vmatpush.bf16.msra.mxu3 %v665_v37  ;;  %470 = vmatpush.bf16.msra.mxu2 %v663_v39 }
  0x69   :  { %691 = vmatpush.bf16.msra.mxu3 %v664_v38 }
  0x6d   :  { %692 = vmatpush.bf16.msra.mxu3 %v663_v39 }
  0x74   :  { %210 = vmatmul.bf16.gmra.mxu0 %v110_v32 }
  0x84   :  { %215 = vmatmul.bf16.gmra.mxu0 %v111_v35 }
  0xb1   :  { %v191_v40 = vpop.f32.mrf.mxu0 }
  0xb2   :  { %v192_v43 = vadd.f32 %v901_v41, %v191_v40  ;;  %v662_v40 = vld [vmem:[#allocation8] sm:$0xff] }
  0xb3   :  { %471 = vmatpush.bf16.msra.mxu2 %v662_v40  ;;  %693 = vmatpush.bf16.msra.mxu3 %v662_v40 }
  0xb4   :  { %v231_v46 = vmax.f32 %v192_v43, 0.0 }
  0xb7   :  { %v221_v42 = vpop.f32.mrf.mxu3 }
  0xb8   :  { %v222_v48 = vadd.f32 %v901_v41, %v221_v42 }
  0xb9   :  { %v193_v44 = vpop.f32.mrf.mxu0 }
  0xba   :  { %v194_v45 = vadd.f32 %v901_v41, %v193_v44  ;;  %v243_v51 = vmax.f32 %v222_v48, 0.0 }
  0xbc   :  { %v232_v47 = vmax.f32 %v194_v45, 0.0 }
  0xbe   :  { %v247_v49 = vpack.c.bf16 %v232_v47, %v231_v46 }
  0xbf   :  { %v223_v50 = vpop.f32.mrf.mxu3 }
  0xc0   :  { %331 = vmatmul.bf16.vlgmr.msra.gmra.mxu1 %v247_v49  ;;  %v224_v52 = vadd.f32 %v901_v41, %v223_v50 }
  0xc1   :  { %v196_v53 = vpop.f32.mrf.mxu0 }
  0xc2   :  { %v244_v54 = vmax.f32 %v224_v52, 0.0  ;;  %v197_v57 = vadd.f32 %v901_v41, %v196_v53 }
  0xc4   :  { %v253_v55 = vpack.c.bf16 %v244_v54, %v243_v51  ;;  %v233_v60 = vmax.f32 %v197_v57, 0.0 }
  0xc6   :  { %361 = vmatmul.bf16.vlgmr.msrb.gmra.mxu3 %v253_v55 }
  0xc7   :  { %v226_v56 = vpop.f32.mrf.mxu3 }
  0xc8   :  { %v227_v62 = vadd.f32 %v901_v41, %v226_v56 }
  0xc9   :  { %v198_v58 = vpop.f32.mrf.mxu0 }
  0xca   :  { %v199_v59 = vadd.f32 %v901_v41, %v198_v58  ;;  %v245_v1 = vmax.f32 %v227_v62, 0.0 }
  0xcc   :  { %v234_v61 = vmax.f32 %v199_v59, 0.0 }
  0xce   :  { %v248_v63 = vpack.c.bf16 %v234_v61, %v233_v60 }
  0xcf   :  { %v228_v0 = vpop.f32.mrf.mxu3 }
  0xd0   :  { %336 = vmatmul.bf16.gmra.mxu1 %v248_v63  ;;  %v229_v2 = vadd.f32 %v901_v41, %v228_v0 }
  0xd1   :  { %v201_v3 = vpop.f32.mrf.mxu0 }
  0xd2   :  { %v246_v4 = vmax.f32 %v229_v2, 0.0  ;;  %v202_v6 = vadd.f32 %v901_v41, %v201_v3 }
  0xd4   :  { %v254_v5 = vpack.c.bf16 %v246_v4, %v245_v1  ;;  %v235_v9 = vmax.f32 %v202_v6, 0.0 }
  0xd6   :  { %366 = vmatmul.bf16.gmra.mxu3 %v254_v5 }
  0xd9   :  { %v203_v7 = vpop.f32.mrf.mxu0 }
  0xda   :  { %v204_v8 = vadd.f32 %v901_v41, %v203_v7 }
  0xdc   :  { %v236_v10 = vmax.f32 %v204_v8, 0.0 }
  0xde   :  { %v249_v11 = vpack.c.bf16 %v236_v10, %v235_v9 }
  0xe0   :  { %341 = vmatmul.bf16.gmra.mxu1 %v249_v11 }
  0xe1   :  { %v206_v12 = vpop.f32.mrf.mxu0 }
  0xe2   :  { %v207_v13 = vadd.f32 %v901_v41, %v206_v12 }
  0xe4   :  { %v237_v16 = vmax.f32 %v207_v13, 0.0 }
  0xe9   :  { %v208_v14 = vpop.f32.mrf.mxu0 }
  0xea   :  { %v209_v15 = vadd.f32 %v901_v41, %v208_v14 }
  0xec   :  { %v238_v17 = vmax.f32 %v209_v15, 0.0 }
  0xee   :  { %v250_v18 = vpack.c.bf16 %v238_v17, %v237_v16 }
  0xf0   :  { %346 = vmatmul.bf16.gmra.mxu1 %v250_v18 }
  0xf1   :  { %v211_v20 = vpop.f32.mrf.mxu0 }
  0xf2   :  { %v212_v23 = vadd.f32 %v901_v41, %v211_v20 }
  0xf4   :  { %v239_v27 = vmax.f32 %v212_v23, 0.0 }
  0xf9   :  { %v213_v24 = vpop.f32.mrf.mxu0 }
  0xfa   :  { %v214_v25 = vadd.f32 %v901_v41, %v213_v24 }
  0xfc   :  { %v240_v28 = vmax.f32 %v214_v25, 0.0 }
  0xfe   :  { %v251_v29 = vpack.c.bf16 %v240_v28, %v239_v27 }
 0x100   :  { %351 = vmatmul.bf16.gmra.mxu1 %v251_v29 }
 0x101   :  { %v216_v30 = vpop.f32.mrf.mxu0 }
 0x102   :  { %v217_v31 = vadd.f32 %v901_v41, %v216_v30 }
 0x104   :  { %v241_v34 = vmax.f32 %v217_v31, 0.0 }
 0x109   :  { %v218_v32 = vpop.f32.mrf.mxu0 }
 0x10a   :  { %v219_v33 = vadd.f32 %v901_v41, %v218_v32  ;;  %v704_v41 = vld [vmem:[%s935_s4] ss:$0 sm:$0xff] }
 0x10c   :  { %v242_v35 = vmax.f32 %v219_v33, 0.0 }
 0x10e   :  { %v252_v36 = vpack.c.bf16 %v242_v35, %v241_v34  ;;  %v705_v34 = vld [vmem:[%s937_s6] ss:$0 sm:$0xff]  ;;  %s842_s6 = smov [#allocation10]  }
 0x10f   :  { %s533_s25 = sshll.u32 %s842_s6, 4  ;;  %s534_s25 = int_to_ptr.vmem [resolvable:$true] %s533_s25 }
 0x110   :  { %356 = vmatmul.bf16.gmra.mxu1 %v252_v36 }
 0x13d   :  { %v332_v42 = vpop.f32.mrf.mxu1 }
 0x13e   :  { %v333_v43 = vadd.f32 %v704_v41, %v332_v42 }
 0x140   :  { %v372_v46 = vmax.f32 %v333_v43, 0.0 }
 0x145   :  { %v334_v44 = vpop.f32.mrf.mxu1 }
 0x146   :  { %v335_v45 = vadd.f32 %v704_v41, %v334_v44 }
 0x148   :  { %v373_v47 = vmax.f32 %v335_v45, 0.0 }
 0x149   :  { %v362_v48 = vpop.f32.mrf.mxu3 }
 0x14a   :  { %v388_v49 = vpack.c.bf16 %v373_v47, %v372_v46  ;;  %v363_v51 = vadd.f32 %v704_v41, %v362_v48 }
 0x14c   :  { %472 = vmatmul.bf16.vlgmr.msra.gmra.mxu2 %v388_v49  ;;  %v384_v53 = vmax.f32 %v363_v51, 0.0 }
 0x14d   :  { %v337_v50 = vpop.f32.mrf.mxu1 }
 0x14e   :  { %v338_v55 = vadd.f32 %v704_v41, %v337_v50 }
 0x150   :  { %v374_v60 = vmax.f32 %v338_v55, 0.0 }
 0x151   :  { %v364_v52 = vpop.f32.mrf.mxu3 }
 0x152   :  { %v365_v54 = vadd.f32 %v704_v41, %v364_v52 }
 0x154   :  { %v385_v56 = vmax.f32 %v365_v54, 0.0 }
 0x155   :  { %v339_v57 = vpop.f32.mrf.mxu1 }
 0x156   :  { %v340_v58 = vadd.f32 %v704_v41, %v339_v57  ;;  %v394_v59 = vpack.c.bf16 %v385_v56, %v384_v53 }
 0x158   :  { %v375_v61 = vmax.f32 %v340_v58, 0.0  ;;  %502 = vmatmul.bf16.vlgmr.msra.gmra.mxu3 %v394_v59 }
 0x159   :  { %v367_v62 = vpop.f32.mrf.mxu3 }
 0x15a   :  { %v389_v63 = vpack.c.bf16 %v375_v61, %v374_v60  ;;  %v368_v1 = vadd.f32 %v704_v41, %v367_v62 }
 0x15c   :  { %477 = vmatmul.bf16.gmra.mxu2 %v389_v63  ;;  %v386_v3 = vmax.f32 %v368_v1, 0.0 }
 0x15d   :  { %v342_v0 = vpop.f32.mrf.mxu1 }
 0x15e   :  { %v343_v5 = vadd.f32 %v704_v41, %v342_v0 }
 0x160   :  { %v376_v10 = vmax.f32 %v343_v5, 0.0 }
 0x161   :  { %v369_v2 = vpop.f32.mrf.mxu3 }
 0x162   :  { %v370_v4 = vadd.f32 %v704_v41, %v369_v2 }
 0x164   :  { %v387_v6 = vmax.f32 %v370_v4, 0.0 }
 0x165   :  { %v344_v7 = vpop.f32.mrf.mxu1 }
 0x166   :  { %v345_v8 = vadd.f32 %v704_v41, %v344_v7  ;;  %v395_v9 = vpack.c.bf16 %v387_v6, %v386_v3 }
 0x168   :  { %v377_v11 = vmax.f32 %v345_v8, 0.0  ;;  %507 = vmatmul.bf16.gmra.mxu3 %v395_v9 }
 0x16a   :  { %v390_v12 = vpack.c.bf16 %v377_v11, %v376_v10 }
 0x16c   :  { %482 = vmatmul.bf16.gmra.mxu2 %v390_v12 }
 0x16d   :  { %v347_v13 = vpop.f32.mrf.mxu1 }
 0x16e   :  { %v348_v14 = vadd.f32 %v704_v41, %v347_v13 }
 0x170   :  { %v378_v17 = vmax.f32 %v348_v14, 0.0 }
 0x175   :  { %v349_v15 = vpop.f32.mrf.mxu1 }
 0x176   :  { %v350_v16 = vadd.f32 %v704_v41, %v349_v15 }
 0x178   :  { %v379_v18 = vmax.f32 %v350_v16, 0.0 }
 0x17a   :  { %v391_v19 = vpack.c.bf16 %v379_v18, %v378_v17 }
 0x17c   :  { %487 = vmatmul.bf16.gmra.mxu2 %v391_v19 }
 0x17d   :  { %v352_v20 = vpop.f32.mrf.mxu1 }
 0x17e   :  { %v353_v21 = vadd.f32 %v704_v41, %v352_v20 }
 0x180   :  { %v380_v24 = vmax.f32 %v353_v21, 0.0 }
 0x185   :  { %v354_v22 = vpop.f32.mrf.mxu1 }
 0x186   :  { %v355_v23 = vadd.f32 %v704_v41, %v354_v22 }
 0x188   :  { %v381_v25 = vmax.f32 %v355_v23, 0.0 }
 0x18a   :  { %v392_v26 = vpack.c.bf16 %v381_v25, %v380_v24 }
 0x18c   :  { %492 = vmatmul.bf16.gmra.mxu2 %v392_v26 }
 0x18d   :  { %v357_v27 = vpop.f32.mrf.mxu1 }
 0x18e   :  { %v358_v28 = vadd.f32 %v704_v41, %v357_v27 }
 0x190   :  { %v382_v31 = vmax.f32 %v358_v28, 0.0 }
 0x195   :  { %v359_v29 = vpop.f32.mrf.mxu1 }
 0x196   :  { %v360_v30 = vadd.f32 %v704_v41, %v359_v29 }
 0x198   :  { %v383_v32 = vmax.f32 %v360_v30, 0.0 }
 0x19a   :  { %v393_v33 = vpack.c.bf16 %v383_v32, %v382_v31 }
 0x19c   :  { %497 = vmatmul.bf16.gmra.mxu2 %v393_v33 }
 0x1cf   :  { %v473_v35 = vpop.f32.mrf.mxu2 }
 0x1d0   :  { %v474_v36 = vadd.f32 %v705_v34, %v473_v35 }
 0x1d2   :  { %513 = vst [vmem:[#allocation10] sm:$0xff] %v474_v36 }
 0x1d7   :  { %v475_v37 = vpop.f32.mrf.mxu2 }
 0x1d8   :  { %v476_v38 = vadd.f32 %v705_v34, %v475_v37 }
 0x1da   :  { %514 = vst [vmem:[#allocation10 + $0x8] sm:$0xff] %v476_v38 }
 0x1db   :  { %v503_v39 = vpop.f32.mrf.mxu3 }
 0x1dc   :  { %v504_v40 = vadd.f32 %v705_v34, %v503_v39 }
 0x1de   :  { %525 = vst [vmem:[#allocation10 + $0x60] sm:$0xff] %v504_v40 }
 0x1df   :  { %v478_v42 = vpop.f32.mrf.mxu2 }
 0x1e0   :  { %v479_v43 = vadd.f32 %v705_v34, %v478_v42 }
 0x1e2   :  { %515 = vst [vmem:[#allocation10 + $0x10] sm:$0xff] %v479_v43 }
 0x1e3   :  { %v505_v41 = vpop.f32.mrf.mxu3 }
 0x1e4   :  { %v506_v44 = vadd.f32 %v705_v34, %v505_v41 }
 0x1e6   :  { %526 = vst [vmem:[#allocation10 + $0x68] sm:$0xff] %v506_v44 }
 0x1e7   :  { %v480_v45 = vpop.f32.mrf.mxu2 }
 0x1e8   :  { %v481_v46 = vadd.f32 %v705_v34, %v480_v45 }
 0x1ea   :  { %516 = vst [vmem:[#allocation10 + $0x18] sm:$0xff] %v481_v46 }
 0x1eb   :  { %v508_v47 = vpop.f32.mrf.mxu3 }
 0x1ec   :  { %v509_v48 = vadd.f32 %v705_v34, %v508_v47 }
 0x1ee   :  { %527 = vst [vmem:[#allocation10 + $0x70] sm:$0xff] %v509_v48 }
 0x1ef   :  { %v483_v49 = vpop.f32.mrf.mxu2 }
 0x1f0   :  { %v484_v50 = vadd.f32 %v705_v34, %v483_v49 }
 0x1f2   :  { %517 = vst [vmem:[#allocation10 + $0x20] sm:$0xff] %v484_v50 }
 0x1f3   :  { %v510_v51 = vpop.f32.mrf.mxu3 }
 0x1f4   :  { %v511_v52 = vadd.f32 %v705_v34, %v510_v51 }
 0x1f6   :  { %528 = vst [vmem:[#allocation10 + $0x78] sm:$0xff] %v511_v52 }
 0x1f7   :  { %v485_v53 = vpop.f32.mrf.mxu2 }
 0x1f8   :  { %v486_v54 = vadd.f32 %v705_v34, %v485_v53 }
 0x1fa   :  { %518 = vst [vmem:[#allocation10 + $0x28] sm:$0xff] %v486_v54 }
 0x1ff   :  { %v488_v55 = vpop.f32.mrf.mxu2 }
 0x200   :  { %v489_v56 = vadd.f32 %v705_v34, %v488_v55 }
 0x202   :  { %519 = vst [vmem:[#allocation10 + $0x30] sm:$0xff] %v489_v56 }
 0x207   :  { %v490_v57 = vpop.f32.mrf.mxu2 }
 0x208   :  { %v491_v58 = vadd.f32 %v705_v34, %v490_v57 }
 0x20a   :  { %520 = vst [vmem:[#allocation10 + $0x38] sm:$0xff] %v491_v58 }
 0x20f   :  { %v493_v59 = vpop.f32.mrf.mxu2 }
 0x210   :  { %v494_v60 = vadd.f32 %v705_v34, %v493_v59 }
 0x212   :  { %521 = vst [vmem:[#allocation10 + $0x40] sm:$0xff] %v494_v60 }
 0x217   :  { %v495_v61 = vpop.f32.mrf.mxu2 }
 0x218   :  { %v496_v62 = vadd.f32 %v705_v34, %v495_v61 }
 0x21a   :  { %522 = vst [vmem:[#allocation10 + $0x48] sm:$0xff] %v496_v62 }
 0x21f   :  { %v498_v63 = vpop.f32.mrf.mxu2 }
 0x220   :  { %v499_v0 = vadd.f32 %v705_v34, %v498_v63 }
 0x222   :  { %523 = vst [vmem:[#allocation10 + $0x50] sm:$0xff] %v499_v0 }
 0x227   :  { %v500_v1 = vpop.f32.mrf.mxu2 }
 0x228   :  { %v501_v2 = vadd.f32 %v705_v34, %v500_v1 }
 0x22a   :  { %524 = vst [vmem:[#allocation10 + $0x58] sm:$0xff] %v501_v2 }
 0x22b   :  { %541 = dma.vmem_to_hbm [thread:$0]  %s534_s25, 2048, %s536_s28, [#allocation4], %s838_s13, %s838_s13, %s839_s14  }
 0x22c   :  { %832 = dma.done.wait [#allocation4], 2048  }
 0x22d   :  { %833 = vsyncadd [#allocation4], 4294965248 }
 0x22e   :  { %546 = vsyncpa [#allocation3], 1 }
 0x22f   :  { %547 = vsyncpa [#allocation6], 1 }
 0x230   :  { %548 = vsyncpa [#allocation9], 1 }
 0x231   :  { %549 = vsyncpa [#allocation4], 1 }

</bundles_post_ra>
